<compile_context>
chip_gen: v7x
topology: tpu7x:2x2x1
jax: 0.10.0
libtpu: 0.0.40
codegen_flags: <defaults>
</compile_context>

<pallas_src>
import jax
import jax.numpy as jnp
from jax.experimental import pallas as pl
from jax.experimental.pallas import tpu as pltpu


TILE = 256  # row-strip height (>=256 so both MXU output dims are full width)


def _round_up(v, m):
    return (v + m - 1) // m * m


def _vmem_limit(*buffer_bytes):
    """Explicit scoped-VMEM limit: double-buffer every block + 1 MiB headroom,
    clamped to [32 MiB, 64 MiB] (>= default scoped limit on v5e/v6e/v7x,
    <= v7x physical VMEM)."""
    need = 2 * sum(int(b) for b in buffer_bytes) + (1 << 20)
    return int(min(max(need, 32 << 20), 64 << 20))


# ----------------------------- kernels ---------------------------------------

def xw_kernel(x_ref, w_ref, xw_ref):
    # XW row strip: (TILE, F) @ (F, H) on the MXU, f32 accumulation, bf16 out.
    xw_ref[...] = jnp.dot(
        x_ref[...], w_ref[...],
        preferred_element_type=jnp.float32).astype(xw_ref.dtype)


def encoder_kernel(a_ref, xw_ref, b_ref, z_ref, zb_ref):
    # Z row strip: A_hat[i] @ XW + b.  A_hat is streamed exactly once (this is
    # the only kernel that reads it).  Emit Z in f32 (returned) and bf16
    # (decoder operand) so the decoder never re-casts per grid step.
    z = jnp.dot(a_ref[...], xw_ref[...],
                preferred_element_type=jnp.float32) + b_ref[...]
    z_ref[...] = z
    zb_ref[...] = z.astype(zb_ref.dtype)


def decoder_kernel(zrow_ref, zall_ref, adj_ref):
    # adj_rec row strip: Z[i] @ Z.T, transpose-free (contract H on both
    # operands -> MXU transposed-RHS path, no XLU transpose).
    adj_ref[...] = jax.lax.dot_general(
        zrow_ref[...], zall_ref[...],
        dimension_numbers=(((1,), (1,)), ((), ())),
        preferred_element_type=jnp.float32)


# --------------------------------- wrapper -----------------------------------

def gae_forward(adj_norm, x, w, b, *, tile=TILE):
    """adj_norm: [N,N] symmetric-normalized adjacency, x: [N,F], w: [F,H], b: [1,H]."""
    n, f = x.shape
    h = w.shape[1]

    np_ = _round_up(n, tile)   # padded node count (lane/sublane dense)
    fp = _round_up(f, 128)     # padded feature dim
    hp = _round_up(h, 128)     # padded hidden dim
    ni = np_ // tile

    # Cast to bf16 BEFORE padding (halves the padded-A/X materialization).
    # Zero padding is exact for real rows/cols; padded outputs sliced off below.
    a_p = jnp.pad(adj_norm.astype(jnp.bfloat16), ((0, np_ - n), (0, np_ - n)))
    x_p = jnp.pad(x.astype(jnp.bfloat16), ((0, np_ - n), (0, fp - f)))
    w_p = jnp.pad(w.astype(jnp.bfloat16), ((0, fp - f), (0, hp - h)))
    b_p = jnp.pad(b.astype(jnp.float32), ((0, 0), (0, hp - h)))

    # --- 1) XW = X @ W --------------------------------------------------------
    xw = pl.pallas_call(
        xw_kernel,
        out_shape=jax.ShapeDtypeStruct((np_, hp), jnp.bfloat16),
        grid_spec=pltpu.PrefetchScalarGridSpec(
            num_scalar_prefetch=0,
            grid=(ni,),
            in_specs=[
                pl.BlockSpec((tile, fp), lambda i: (i, 0)),   # X row strip
                pl.BlockSpec((fp, hp), lambda i: (0, 0)),     # W (resident)
            ],
            out_specs=pl.BlockSpec((tile, hp), lambda i: (i, 0)),
        ),
        compiler_params=pltpu.CompilerParams(
            dimension_semantics=("parallel",),
            vmem_limit_bytes=_vmem_limit(tile * fp * 2, fp * hp * 2,
                                         tile * hp * 2),
        ),
    )(x_p, w_p)

    # --- 2) Z = A_hat @ XW + b  (GraphConv, norm='both', no activation) ------
    z_f32, z_bf16 = pl.pallas_call(
        encoder_kernel,
        out_shape=(
            jax.ShapeDtypeStruct((np_, hp), jnp.float32),    # Z (returned)
            jax.ShapeDtypeStruct((np_, hp), jnp.bfloat16),   # Z (decoder input)
        ),
        grid_spec=pltpu.PrefetchScalarGridSpec(
            num_scalar_prefetch=0,
            grid=(ni,),
            in_specs=[
                pl.BlockSpec((tile, np_), lambda i: (i, 0)),  # A_hat row strip
                pl.BlockSpec((np_, hp), lambda i: (0, 0)),    # XW (resident)
                pl.BlockSpec((1, hp), lambda i: (0, 0)),      # bias
            ],
            out_specs=[
                pl.BlockSpec((tile, hp), lambda i: (i, 0)),   # Z f32 strip
                pl.BlockSpec((tile, hp), lambda i: (i, 0)),   # Z bf16 strip
            ],
        ),
        compiler_params=pltpu.CompilerParams(
            dimension_semantics=("parallel",),
            vmem_limit_bytes=_vmem_limit(tile * np_ * 2, np_ * hp * 2, hp * 4,
                                         tile * hp * 4, tile * hp * 2),
        ),
    )(a_p, xw, b_p)

    # --- 3) adj_rec = Z @ Z.T  (InnerProductDecoder, identity activation) ----
    adj_rec_p = pl.pallas_call(
        decoder_kernel,
        out_shape=jax.ShapeDtypeStruct((np_, np_), jnp.float32),
        grid_spec=pltpu.PrefetchScalarGridSpec(
            num_scalar_prefetch=0,
            grid=(ni,),
            in_specs=[
                pl.BlockSpec((tile, hp), lambda i: (i, 0)),   # Z row strip
                pl.BlockSpec((np_, hp), lambda i: (0, 0)),    # full Z (resident)
            ],
            out_specs=pl.BlockSpec((tile, np_), lambda i: (i, 0)),  # adj strip
        ),
        compiler_params=pltpu.CompilerParams(
            dimension_semantics=("parallel",),
            vmem_limit_bytes=_vmem_limit(tile * hp * 2, np_ * hp * 2,
                                         tile * np_ * 4),
        ),
    )(z_bf16, z_bf16)

    return adj_rec_p[:n, :n], z_f32[:n, :h]


# ------------------------------ glue / setup ---------------------------------

def build_normalized_adjacency(n):
    """Deterministic synthetic graph: ring + self loops, symmetric norm (DGL 'both')."""
    idx = jnp.arange(n)
    a = jnp.zeros((n, n), jnp.float32)
    a = a.at[idx, (idx + 1) % n].set(1.0)
    a = a.at[(idx + 1) % n, idx].set(1.0)
    a = a + jnp.eye(n, dtype=jnp.float32)          # self loops
    deg = a.sum(axis=1)
    d_inv_sqrt = 1.0 / jnp.sqrt(deg)
    return a * d_inv_sqrt[:, None] * d_inv_sqrt[None, :]


if __name__ == "__main__":
    # Small shapes consistent with the module; padded internally to 256/128/128.
    N, IN_FEATS, N_HIDDEN = 200, 16, 32

    key = jax.random.PRNGKey(0)
    k_x, k_w, k_b = jax.random.split(key, 3)

    features = jax.random.normal(k_x, (N, IN_FEATS), dtype=jnp.float32)
    w = jax.random.normal(k_w, (IN_FEATS, N_HIDDEN), dtype=jnp.float32) * 0.1
    b = jax.random.normal(k_b, (1, N_HIDDEN), dtype=jnp.float32) * 0.01
    adj_norm = build_normalized_adjacency(N)

    adj_rec, z = jax.jit(gae_forward)(adj_norm, features, w, b)
    jax.block_until_ready((adj_rec, z))

    # Plain-JAX reference mirroring the kernel's bf16-input / f32-accumulate
    # numerics (eval-mode dropout = identity, identity decoder activation).
    a_b = adj_norm.astype(jnp.bfloat16)
    x_b = features.astype(jnp.bfloat16)
    w_b = w.astype(jnp.bfloat16)
    xw_r = jnp.dot(x_b, w_b, preferred_element_type=jnp.float32).astype(jnp.bfloat16)
    z_ref = jnp.dot(a_b, xw_r, preferred_element_type=jnp.float32) + b
    z_ref_bf = z_ref.astype(jnp.bfloat16)
    adj_ref = jnp.dot(z_ref_bf, z_ref_bf.T, preferred_element_type=jnp.float32)

    assert z.shape == (N, N_HIDDEN) and adj_rec.shape == (N, N)
    assert jnp.allclose(z, z_ref, atol=1e-2, rtol=1e-2)
    assert jnp.allclose(adj_rec, adj_ref, atol=1e-2, rtol=1e-2)

    print("KERNEL_OK")
</pallas_src>

<mosaic_0001>
module attributes {stable_mosaic.version = 11 : i64} {
  func.func @xw_kernel(%arg0: i32, %arg1: memref<256x128xbf16, #tpu.memory_space<vmem>>, %arg2: memref<128x128xbf16, #tpu.memory_space<vmem>>, %arg3: memref<256x128xbf16, #tpu.memory_space<vmem>>) attributes {dimension_semantics = [#tpu.dimension_semantics<parallel>], iteration_bounds = array<i64: 1>, scalar_prefetch = 0 : i64, scratch_operands = 0 : i64, tpu.core_type = #tpu.core_type<tc>, window_params = [{transform_indices = @transform_0, window_bounds = array<i64: 256, 128>}, {pipeline_mode = #tpu.pipeline_mode<synchronous>, transform_indices = @transform_1, window_bounds = array<i64: 128, 128>}, {transform_indices = @transform_2, window_bounds = array<i64: 256, 128>}]} {
    %c0 = arith.constant 0 : index
    %c0_0 = arith.constant 0 : index
    %0 = vector.load %arg1[%c0, %c0_0] : memref<256x128xbf16, #tpu.memory_space<vmem>>, vector<256x128xbf16>
    %c0_1 = arith.constant 0 : index
    %c0_2 = arith.constant 0 : index
    %1 = vector.load %arg2[%c0_1, %c0_2] : memref<128x128xbf16, #tpu.memory_space<vmem>>, vector<128x128xbf16>
    %cst = arith.constant dense<0.000000e+00> : vector<256x128xf32>
    %2 = tpu.matmul %0, %1, %cst {dimension_numbers = #tpu.dot_dimension_numbers<[1], [0], [0], [1], [0, 0, 1, 1], [], []>} : vector<256x128xbf16>, vector<128x128xbf16>, vector<256x128xf32> -> vector<256x128xf32>
    %3 = arith.truncf %2 : vector<256x128xf32> to vector<256x128xbf16>
    %c0_3 = arith.constant 0 : index
    %c0_4 = arith.constant 0 : index
    %4 = vector.load %arg3[%c0_3, %c0_4] : memref<256x128xbf16, #tpu.memory_space<vmem>>, vector<256x128xbf16>
    tpu.vector_store %arg3[%c0_3, %c0_4], %3 {strides = array<i32>} : memref<256x128xbf16, #tpu.memory_space<vmem>>, vector<256x128xbf16>,
    return
  }
  func.func @transform_0(%arg0: i32) -> (i32, i32) {
    %c0_i32 = arith.constant 0 : i32
    %c0_i32_0 = arith.constant 0 : i32
    return %arg0, %c0_i32 : i32, i32
  }
  func.func @transform_1(%arg0: i32) -> (i32, i32) {
    %c0_i32 = arith.constant 0 : i32
    %c0_i32_0 = arith.constant 0 : i32
    %c0_i32_1 = arith.constant 0 : i32
    return %c0_i32, %c0_i32_0 : i32, i32
  }
  func.func @transform_2(%arg0: i32) -> (i32, i32) {
    %c0_i32 = arith.constant 0 : i32
    %c0_i32_0 = arith.constant 0 : i32
    return %arg0, %c0_i32 : i32, i32
  }
}

module attributes {stable_mosaic.version = 11 : i64} {
  func.func @encoder_kernel(%arg0: i32, %arg1: memref<256x256xbf16, #tpu.memory_space<vmem>>, %arg2: memref<256x128xbf16, #tpu.memory_space<vmem>>, %arg3: memref<1x128xf32, #tpu.memory_space<vmem>>, %arg4: memref<256x128xf32, #tpu.memory_space<vmem>>, %arg5: memref<256x128xbf16, #tpu.memory_space<vmem>>) attributes {dimension_semantics = [#tpu.dimension_semantics<parallel>], iteration_bounds = array<i64: 1>, scalar_prefetch = 0 : i64, scratch_operands = 0 : i64, tpu.core_type = #tpu.core_type<tc>, window_params = [{transform_indices = @transform_0, window_bounds = array<i64: 256, 256>}, {pipeline_mode = #tpu.pipeline_mode<synchronous>, transform_indices = @transform_1, window_bounds = array<i64: 256, 128>}, {pipeline_mode = #tpu.pipeline_mode<synchronous>, transform_indices = @transform_2, window_bounds = array<i64: 1, 128>}, {transform_indices = @transform_3, window_bounds = array<i64: 256, 128>}, {transform_indices = @transform_4, window_bounds = array<i64: 256, 128>}]} {
    %c0 = arith.constant 0 : index
    %c0_0 = arith.constant 0 : index
    %0 = vector.load %arg1[%c0, %c0_0] : memref<256x256xbf16, #tpu.memory_space<vmem>>, vector<256x256xbf16>
    %c0_1 = arith.constant 0 : index
    %c0_2 = arith.constant 0 : index
    %1 = vector.load %arg2[%c0_1, %c0_2] : memref<256x128xbf16, #tpu.memory_space<vmem>>, vector<256x128xbf16>
    %cst = arith.constant dense<0.000000e+00> : vector<256x128xf32>
    %2 = tpu.matmul %0, %1, %cst {dimension_numbers = #tpu.dot_dimension_numbers<[1], [0], [0], [1], [0, 0, 1, 1], [], []>} : vector<256x256xbf16>, vector<256x128xbf16>, vector<256x128xf32> -> vector<256x128xf32>
    %c0_3 = arith.constant 0 : index
    %c0_4 = arith.constant 0 : index
    %3 = vector.load %arg3[%c0_3, %c0_4] : memref<1x128xf32, #tpu.memory_space<vmem>>, vector<1x128xf32>
    %4 = vector.broadcast %3 : vector<1x128xf32> to vector<256x128xf32>
    %5 = arith.addf %2, %4 : vector<256x128xf32>
    %c0_5 = arith.constant 0 : index
    %c0_6 = arith.constant 0 : index
    %6 = vector.load %arg4[%c0_5, %c0_6] : memref<256x128xf32, #tpu.memory_space<vmem>>, vector<256x128xf32>
    tpu.vector_store %arg4[%c0_5, %c0_6], %5 {strides = array<i32>} : memref<256x128xf32, #tpu.memory_space<vmem>>, vector<256x128xf32>,
    %7 = arith.truncf %5 : vector<256x128xf32> to vector<256x128xbf16>
    %c0_7 = arith.constant 0 : index
    %c0_8 = arith.constant 0 : index
    %8 = vector.load %arg5[%c0_7, %c0_8] : memref<256x128xbf16, #tpu.memory_space<vmem>>, vector<256x128xbf16>
    tpu.vector_store %arg5[%c0_7, %c0_8], %7 {strides = array<i32>} : memref<256x128xbf16, #tpu.memory_space<vmem>>, vector<256x128xbf16>,
    return
  }
  func.func @transform_0(%arg0: i32) -> (i32, i32) {
    %c0_i32 = arith.constant 0 : i32
    %c0_i32_0 = arith.constant 0 : i32
    return %arg0, %c0_i32 : i32, i32
  }
  func.func @transform_1(%arg0: i32) -> (i32, i32) {
    %c0_i32 = arith.constant 0 : i32
    %c0_i32_0 = arith.constant 0 : i32
    %c0_i32_1 = arith.constant 0 : i32
    return %c0_i32, %c0_i32_0 : i32, i32
  }
  func.func @transform_2(%arg0: i32) -> (i32, i32) {
    %c0_i32 = arith.constant 0 : i32
    %c0_i32_0 = arith.constant 0 : i32
    %c0_i32_1 = arith.constant 0 : i32
    return %c0_i32, %c0_i32_0 : i32, i32
  }
  func.func @transform_3(%arg0: i32) -> (i32, i32) {
    %c0_i32 = arith.constant 0 : i32
    %c0_i32_0 = arith.constant 0 : i32
    return %arg0, %c0_i32 : i32, i32
  }
  func.func @transform_4(%arg0: i32) -> (i32, i32) {
    %c0_i32 = arith.constant 0 : i32
    %c0_i32_0 = arith.constant 0 : i32
    return %arg0, %c0_i32 : i32, i32
  }
}

module attributes {stable_mosaic.version = 11 : i64} {
  func.func @decoder_kernel(%arg0: i32, %arg1: memref<256x128xbf16, #tpu.memory_space<vmem>>, %arg2: memref<256x128xbf16, #tpu.memory_space<vmem>>, %arg3: memref<256x256xf32, #tpu.memory_space<vmem>>) attributes {dimension_semantics = [#tpu.dimension_semantics<parallel>], iteration_bounds = array<i64: 1>, scalar_prefetch = 0 : i64, scratch_operands = 0 : i64, tpu.core_type = #tpu.core_type<tc>, window_params = [{transform_indices = @transform_0, window_bounds = array<i64: 256, 128>}, {pipeline_mode = #tpu.pipeline_mode<synchronous>, transform_indices = @transform_1, window_bounds = array<i64: 256, 128>}, {transform_indices = @transform_2, window_bounds = array<i64: 256, 256>}]} {
    %c0 = arith.constant 0 : index
    %c0_0 = arith.constant 0 : index
    %0 = vector.load %arg1[%c0, %c0_0] : memref<256x128xbf16, #tpu.memory_space<vmem>>, vector<256x128xbf16>
    %c0_1 = arith.constant 0 : index
    %c0_2 = arith.constant 0 : index
    %1 = vector.load %arg2[%c0_1, %c0_2] : memref<256x128xbf16, #tpu.memory_space<vmem>>, vector<256x128xbf16>
    %cst = arith.constant dense<0.000000e+00> : vector<256x256xf32>
    %2 = tpu.matmul %0, %1, %cst {dimension_numbers = #tpu.dot_dimension_numbers<[1], [1], [0], [0], [0, 0, 1, 0], [], []>} : vector<256x128xbf16>, vector<256x128xbf16>, vector<256x256xf32> -> vector<256x256xf32>
    %c0_3 = arith.constant 0 : index
    %c0_4 = arith.constant 0 : index
    %3 = vector.load %arg3[%c0_3, %c0_4] : memref<256x256xf32, #tpu.memory_space<vmem>>, vector<256x256xf32>
    tpu.vector_store %arg3[%c0_3, %c0_4], %2 {strides = array<i32>} : memref<256x256xf32, #tpu.memory_space<vmem>>, vector<256x256xf32>,
    return
  }
  func.func @transform_0(%arg0: i32) -> (i32, i32) {
    %c0_i32 = arith.constant 0 : i32
    %c0_i32_0 = arith.constant 0 : i32
    return %arg0, %c0_i32 : i32, i32
  }
  func.func @transform_1(%arg0: i32) -> (i32, i32) {
    %c0_i32 = arith.constant 0 : i32
    %c0_i32_0 = arith.constant 0 : i32
    %c0_i32_1 = arith.constant 0 : i32
    return %c0_i32, %c0_i32_0 : i32, i32
  }
  func.func @transform_2(%arg0: i32) -> (i32, i32) {
    %c0_i32 = arith.constant 0 : i32
    %c0_i32_0 = arith.constant 0 : i32
    return %arg0, %c0_i32 : i32, i32
  }
}

</mosaic_0001>

<bundles_post_ra>
// kernel: gae_forward.3
= control target key start
LH: loop header
LB: loop body
LE: loop exit
PB: predicated region body
PF: predicated region fallthrough
CT: control target
= control target key end

     0   :  { %s959_s1 = inlined_call_operand.vmem [shape: bf16[128,128], index: 1, kind: input, shape index: {}]   ;;  %s960_s0 = inlined_call_operand.vmem [shape: bf16[256,128], index: 0, kind: input, shape index: {}]   ;;  %s961_s2 = inlined_call_operand.vmem [shape: bf16[256,128], index: 2, kind: output, shape index: {}]  }
   0x1   :  { %v800_v0 = vld [vmem:[%s959_s1] sm:$0xff]   ;;  %v801_v1 = vld [vmem:[%s959_s1 + $0x8] sm:$0xff]   ;;  %v802_v2 = vld [vmem:[%s959_s1 + $0x10] sm:$0xff]  }
   0x2   :  { %736 = vmatprep.subr.bf16.mxu0 %v800_v0  ;;  %784 = vmatprep.subr.bf16.mxu1 %v800_v0  ;;  %v803_v3 = vld [vmem:[%s959_s1 + $0x18] sm:$0xff]   ;;  %v808_v4 = vld [vmem:[%s960_s0] sm:$0xff]   ;;  %v805_v7 = vld [vmem:[%s959_s1 + $0x28] sm:$0xff]  }
   0x3   :  { %737 = vmatpush3.bf16.msra.mxu0 %v800_v0  ;;  %792 = vmatpush3.bf16.msra.mxu1 %v800_v0  ;;  %v809_v5 = vld [vmem:[%s960_s0 + $0x40] sm:$0xff]   ;;  %v806_v8 = vld [vmem:[%s959_s1 + $0x30] sm:$0xff]   ;;  %v807_v9 = vld [vmem:[%s959_s1 + $0x38] sm:$0xff]  }
   0x4   :  { %738 = vmatprep.subr.bf16.mxu0 %v801_v1  ;;  %785 = vmatprep.subr.bf16.mxu1 %v801_v1  ;;  %v804_v6 = vld [vmem:[%s959_s1 + $0x20] sm:$0xff]   ;;  %v810_v10 = vld [vmem:[%s960_s0 + $0x8] sm:$0xff]   ;;  %v812_v12 = vld [vmem:[%s960_s0 + $0x10] sm:$0xff]  }
   0x5   :  { %752 = vmatprep.mubr.bf16.mxu0 %v808_v4  ;;  %768 = vmatprep.mubr.bf16.mxu1 %v809_v5  ;;  %v811_v11 = vld [vmem:[%s960_s0 + $0x48] sm:$0xff]   ;;  %v813_v13 = vld [vmem:[%s960_s0 + $0x50] sm:$0xff]   ;;  %v814_v14 = vld [vmem:[%s960_s0 + $0x18] sm:$0xff]  }
   0x6   :  { %v815_v15 = vld [vmem:[%s960_s0 + $0x58] sm:$0xff]   ;;  %v816_v16 = vld [vmem:[%s960_s0 + $0x20] sm:$0xff]   ;;  %v818_v18 = vld [vmem:[%s960_s0 + $0x28] sm:$0xff]  }
   0x7   :  { %739 = vmatpush3.bf16.msra.mxu0 %v801_v1  ;;  %793 = vmatpush3.bf16.msra.mxu1 %v801_v1  ;;  %v817_v17 = vld [vmem:[%s960_s0 + $0x60] sm:$0xff]   ;;  %v819_v19 = vld [vmem:[%s960_s0 + $0x68] sm:$0xff]   ;;  %v820_v20 = vld [vmem:[%s960_s0 + $0x30] sm:$0xff]  }
   0x8   :  { %740 = vmatprep.subr.bf16.mxu0 %v802_v2  ;;  %786 = vmatprep.subr.bf16.mxu1 %v802_v2  ;;  %v821_v21 = vld [vmem:[%s960_s0 + $0x70] sm:$0xff]   ;;  %v822_v22 = vld [vmem:[%s960_s0 + $0x38] sm:$0xff]  }
   0x9   :  { %v823_v23 = vld [vmem:[%s960_s0 + $0x78] sm:$0xff]  }
   0xb   :  { %741 = vmatpush3.bf16.msra.mxu0 %v802_v2  ;;  %794 = vmatpush3.bf16.msra.mxu1 %v802_v2 }
   0xc   :  { %742 = vmatprep.subr.bf16.mxu0 %v803_v3  ;;  %787 = vmatprep.subr.bf16.mxu1 %v803_v3 }
   0xf   :  { %743 = vmatpush3.bf16.msra.mxu0 %v803_v3  ;;  %795 = vmatpush3.bf16.msra.mxu1 %v803_v3 }
  0x10   :  { %744 = vmatprep.subr.bf16.mxu0 %v804_v6  ;;  %788 = vmatprep.subr.bf16.mxu1 %v804_v6 }
  0x13   :  { %745 = vmatpush3.bf16.msra.mxu0 %v804_v6  ;;  %796 = vmatpush3.bf16.msra.mxu1 %v804_v6 }
  0x14   :  { %746 = vmatprep.subr.bf16.mxu0 %v805_v7  ;;  %789 = vmatprep.subr.bf16.mxu1 %v805_v7 }
  0x17   :  { %747 = vmatpush3.bf16.msra.mxu0 %v805_v7  ;;  %797 = vmatpush3.bf16.msra.mxu1 %v805_v7 }
  0x18   :  { %748 = vmatprep.subr.bf16.mxu0 %v806_v8  ;;  %790 = vmatprep.subr.bf16.mxu1 %v806_v8 }
  0x1b   :  { %749 = vmatpush3.bf16.msra.mxu0 %v806_v8  ;;  %798 = vmatpush3.bf16.msra.mxu1 %v806_v8 }
  0x1c   :  { %750 = vmatprep.subr.bf16.mxu0 %v807_v9  ;;  %791 = vmatprep.subr.bf16.mxu1 %v807_v9 }
  0x1f   :  { %751 = vmatpush3.bf16.msra.mxu0 %v807_v9  ;;  %799 = vmatpush3.bf16.msra.mxu1 %v807_v9 }
  0x22   :  { %753 = vmatmul.mubr.bf16.vlgmr.msra.gmra.mrb[0].mxu0 %v810_v10  ;;  %769 = vmatmul.mubr.bf16.vlgmr.msra.gmra.mrb[0].mxu1 %v811_v11 }
  0x23   :  { %756 = vmatprep.mubr.bf16.mxu0 %v812_v12  ;;  %772 = vmatprep.mubr.bf16.mxu1 %v813_v13 }
  0x2a   :  { %757 = vmatmul.mubr.bf16.gmra.mrb[4].mxu0 %v814_v14  ;;  %773 = vmatmul.mubr.bf16.gmra.mrb[4].mxu1 %v815_v15 }
  0x2b   :  { %760 = vmatprep.mubr.bf16.mxu0 %v816_v16  ;;  %776 = vmatprep.mubr.bf16.mxu1 %v817_v17 }
  0x32   :  { %761 = vmatmul.mubr.bf16.gmra.mrb[8].mxu0 %v818_v18  ;;  %777 = vmatmul.mubr.bf16.gmra.mrb[8].mxu1 %v819_v19 }
  0x33   :  { %764 = vmatprep.mubr.bf16.mxu0 %v820_v20  ;;  %780 = vmatprep.mubr.bf16.mxu1 %v821_v21 }
  0x3a   :  { %765 = vmatmul.mubr.bf16.gmra.mrb[12].mxu0 %v822_v22  ;;  %781 = vmatmul.mubr.bf16.gmra.mrb[12].mxu1 %v823_v23 }
  0xf5   :  { %v754_v24 = vpop.f32.mrb[0].mxu0  ;;  %v770_v25 = vpop.f32.mrb[0].mxu1 }
  0xf6   :  { %v238_v26 = vpop.f32.mrb[1].mxu0  ;;  %v302_v27 = vpop.f32.mrb[1].mxu1 }
  0xf7   :  { %v755_v28 = vpop.f32.mrb[2].mxu0  ;;  %v771_v29 = vpop.f32.mrb[2].mxu1 }
  0xf8   :  { %v625_v30 = vpack.c.bf16 %v755_v28, %v754_v24  ;;  %v665_v31 = vpack.c.bf16 %v771_v29, %v770_v25  ;;  %v241_v32 = vpop.f32.mrb[3].mxu0  ;;  %v305_v33 = vpop.f32.mrb[3].mxu1 }
  0xf9   :  { %v620_v34 = vpack.c.bf16 %v241_v32, %v238_v26  ;;  %v660_v35 = vpack.c.bf16 %v305_v33, %v302_v27 }
  0xfa   :  { %697 = vst [vmem:[%s961_s2 + $0x8] sm:$0xff] %v625_v30   ;;  %705 = vst [vmem:[%s961_s2 + $0x48] sm:$0xff] %v665_v31  }
  0xfb   :  { %621 = vst [vmem:[%s961_s2] sm:$0xff] %v620_v34   ;;  %704 = vst [vmem:[%s961_s2 + $0x40] sm:$0xff] %v660_v35  }
  0xfd   :  { %v758_v36 = vpop.f32.mrb[4].mxu0  ;;  %v774_v37 = vpop.f32.mrb[4].mxu1 }
  0xfe   :  { %v254_v38 = vpop.f32.mrb[5].mxu0  ;;  %v318_v39 = vpop.f32.mrb[5].mxu1 }
  0xff   :  { %v759_v40 = vpop.f32.mrb[6].mxu0  ;;  %v775_v41 = vpop.f32.mrb[6].mxu1 }
 0x100   :  { %v635_v42 = vpack.c.bf16 %v759_v40, %v758_v36  ;;  %v675_v43 = vpack.c.bf16 %v775_v41, %v774_v37  ;;  %v257_v44 = vpop.f32.mrb[7].mxu0  ;;  %v321_v45 = vpop.f32.mrb[7].mxu1 }
 0x101   :  { %v630_v46 = vpack.c.bf16 %v257_v44, %v254_v38  ;;  %v670_v47 = vpack.c.bf16 %v321_v45, %v318_v39 }
 0x102   :  { %699 = vst [vmem:[%s961_s2 + $0x18] sm:$0xff] %v635_v42   ;;  %707 = vst [vmem:[%s961_s2 + $0x58] sm:$0xff] %v675_v43  }
 0x103   :  { %698 = vst [vmem:[%s961_s2 + $0x10] sm:$0xff] %v630_v46   ;;  %706 = vst [vmem:[%s961_s2 + $0x50] sm:$0xff] %v670_v47  }
 0x105   :  { %v762_v48 = vpop.f32.mrb[8].mxu0  ;;  %v778_v49 = vpop.f32.mrb[8].mxu1 }
 0x106   :  { %v270_v50 = vpop.f32.mrb[9].mxu0  ;;  %v334_v51 = vpop.f32.mrb[9].mxu1 }
 0x107   :  { %v763_v52 = vpop.f32.mrb[10].mxu0  ;;  %v779_v53 = vpop.f32.mrb[10].mxu1 }
 0x108   :  { %v645_v54 = vpack.c.bf16 %v763_v52, %v762_v48  ;;  %v685_v55 = vpack.c.bf16 %v779_v53, %v778_v49  ;;  %v273_v56 = vpop.f32.mrb[11].mxu0  ;;  %v337_v57 = vpop.f32.mrb[11].mxu1 }
 0x109   :  { %v640_v58 = vpack.c.bf16 %v273_v56, %v270_v50  ;;  %v680_v59 = vpack.c.bf16 %v337_v57, %v334_v51 }
 0x10a   :  { %701 = vst [vmem:[%s961_s2 + $0x28] sm:$0xff] %v645_v54   ;;  %709 = vst [vmem:[%s961_s2 + $0x68] sm:$0xff] %v685_v55  }
 0x10b   :  { %700 = vst [vmem:[%s961_s2 + $0x20] sm:$0xff] %v640_v58   ;;  %708 = vst [vmem:[%s961_s2 + $0x60] sm:$0xff] %v680_v59  }
 0x10d   :  { %v766_v60 = vpop.f32.mrb[12].mxu0  ;;  %v782_v61 = vpop.f32.mrb[12].mxu1 }
 0x10e   :  { %v286_v62 = vpop.f32.mrb[13].mxu0  ;;  %v350_v63 = vpop.f32.mrb[13].mxu1 }
 0x10f   :  { %v767_v0 = vpop.f32.mrb[14].mxu0  ;;  %v783_v1 = vpop.f32.mrb[14].mxu1 }
 0x110   :  { %v655_v2 = vpack.c.bf16 %v767_v0, %v766_v60  ;;  %v695_v3 = vpack.c.bf16 %v783_v1, %v782_v61  ;;  %v289_v4 = vpop.f32.mrb[15].mxu0  ;;  %v353_v5 = vpop.f32.mrb[15].mxu1 }
 0x111   :  { %v650_v6 = vpack.c.bf16 %v289_v4, %v286_v62  ;;  %v690_v7 = vpack.c.bf16 %v353_v5, %v350_v63 }
 0x112   :  { %703 = vst [vmem:[%s961_s2 + $0x38] sm:$0xff] %v655_v2   ;;  %711 = vst [vmem:[%s961_s2 + $0x78] sm:$0xff] %v695_v3  }
 0x113   :  { %702 = vst [vmem:[%s961_s2 + $0x30] sm:$0xff] %v650_v6   ;;  %710 = vst [vmem:[%s961_s2 + $0x70] sm:$0xff] %v690_v7  }

// kernel: gae_forward.4
= control target key start
LH: loop header
LB: loop body
LE: loop exit
PB: predicated region body
PF: predicated region fallthrough
CT: control target
= control target key end

     0   :  { %s1455_s1 = inlined_call_operand.vmem [shape: bf16[256,128], index: 1, kind: input, shape index: {}]   ;;  %s1456_s0 = inlined_call_operand.vmem [shape: bf16[256,256], index: 0, kind: input, shape index: {}]   ;;  %s1457_s2 = inlined_call_operand.vmem [shape: f32[1,128], index: 2, kind: input, shape index: {}]   ;;  %s1458_s3 = inlined_call_operand.vmem [shape: f32[256,128], index: 3, kind: output, shape index: {0}]   ;;  %s1459_s4 = inlined_call_operand.vmem [shape: bf16[256,128], index: 4, kind: output, shape index: {1}]  }
   0x1   :  { %v1041_v0 = vld [vmem:[%s1455_s1 + $0x40] sm:$0xff]   ;;  %v1043_v2 = vld [vmem:[%s1455_s1 + $0x48] sm:$0xff]   ;;  %v1045_v4 = vld [vmem:[%s1455_s1 + $0x50] sm:$0xff]  }
   0x2   :  { %v1042_v1 = vld [vmem:[%s1455_s1] sm:$0xff]   ;;  %913 = vmatprep.subr.bf16.mxu0 %v1041_v0  ;;  %1025 = vmatprep.subr.bf16.mxu1 %v1041_v0  ;;  %v1044_v3 = vld [vmem:[%s1455_s1 + $0x8] sm:$0xff]   ;;  %v1046_v5 = vld [vmem:[%s1455_s1 + $0x10] sm:$0xff]  }
   0x3   :  { %914 = vmatpush3.bf16.msra.mxu0 %v1042_v1  ;;  %1033 = vmatpush3.bf16.msra.mxu1 %v1042_v1  ;;  %v1047_v6 = vld [vmem:[%s1455_s1 + $0x58] sm:$0xff]   ;;  %v1049_v8 = vld [vmem:[%s1455_s1 + $0x60] sm:$0xff]   ;;  %v1051_v10 = vld [vmem:[%s1455_s1 + $0x68] sm:$0xff]  }
   0x4   :  { %915 = vmatprep.subr.bf16.mxu0 %v1043_v2  ;;  %1026 = vmatprep.subr.bf16.mxu1 %v1043_v2  ;;  %v1048_v7 = vld [vmem:[%s1455_s1 + $0x18] sm:$0xff]   ;;  %v1050_v9 = vld [vmem:[%s1455_s1 + $0x20] sm:$0xff]   ;;  %v1052_v13 = vld [vmem:[%s1455_s1 + $0x28] sm:$0xff]  }
   0x5   :  { %v1059_v11 = vld [vmem:[%s1456_s0 + $0x4] ss:$8 sps:$4 sm:$0xff]   ;;  %v1053_v14 = vld [vmem:[%s1455_s1 + $0x70] sm:$0xff]   ;;  %v1055_v16 = vld [vmem:[%s1455_s1 + $0x78] sm:$0xff]  }
   0x6   :  { %v1062_v12 = vld [vmem:[%s1456_s0 + $0x84] ss:$8 sps:$4 sm:$0xff]   ;;  %376 = vmatprep.mubr.bf16.mxu0 %v1059_v11  ;;  %v1054_v15 = vld [vmem:[%s1455_s1 + $0x30] sm:$0xff]   ;;  %v1056_v17 = vld [vmem:[%s1455_s1 + $0x38] sm:$0xff]  }
   0x7   :  { %916 = vmatpush3.bf16.msra.mxu0 %v1044_v3  ;;  %1034 = vmatpush3.bf16.msra.mxu1 %v1044_v3  ;;  %v1057_v18 = vld [vmem:[%s1456_s0] ss:$8 sps:$4 sm:$0xff]   ;;  %v1063_v20 = vld [vmem:[%s1456_s0 + $0x14] ss:$8 sps:$4 sm:$0xff]   ;;  %v1067_v22 = vld [vmem:[%s1456_s0 + $0x10] ss:$8 sps:$4 sm:$0xff]  }
   0x8   :  { %917 = vmatprep.subr.bf16.mxu0 %v1045_v4  ;;  %1027 = vmatprep.subr.bf16.mxu1 %v1045_v4  ;;  %v1060_v19 = vld [vmem:[%s1456_s0 + $0x80] ss:$8 sps:$4 sm:$0xff]   ;;  %v1065_v21 = vld [vmem:[%s1456_s0 + $0x94] ss:$8 sps:$4 sm:$0xff]   ;;  %v1068_v23 = vld [vmem:[%s1456_s0 + $0x90] ss:$8 sps:$4 sm:$0xff]  }
   0x9   :  { %440 = vmatprep.mubr.bf16.mxu1 %v1062_v12  ;;  %v1069_v24 = vld [vmem:[%s1456_s0 + $0x24] ss:$8 sps:$4 sm:$0xff]   ;;  %v1073_v26 = vld [vmem:[%s1456_s0 + $0x20] ss:$8 sps:$4 sm:$0xff]   ;;  %v1075_v28 = vld [vmem:[%s1456_s0 + $0x34] ss:$8 sps:$4 sm:$0xff]  }
   0xa   :  { %v1071_v25 = vld [vmem:[%s1456_s0 + $0xa4] ss:$8 sps:$4 sm:$0xff]   ;;  %v1074_v27 = vld [vmem:[%s1456_s0 + $0xa0] ss:$8 sps:$4 sm:$0xff]   ;;  %v1077_v29 = vld [vmem:[%s1456_s0 + $0xb4] ss:$8 sps:$4 sm:$0xff]  }
   0xb   :  { %918 = vmatpush3.bf16.msra.mxu0 %v1046_v5  ;;  %1035 = vmatpush3.bf16.msra.mxu1 %v1046_v5  ;;  %v1079_v30 = vld [vmem:[%s1456_s0 + $0x30] ss:$8 sps:$4 sm:$0xff]   ;;  %v1081_v32 = vld [vmem:[%s1456_s0 + $0x44] ss:$8 sps:$4 sm:$0xff]   ;;  %v1085_v34 = vld [vmem:[%s1456_s0 + $0x40] ss:$8 sps:$4 sm:$0xff]  }
   0xc   :  { %919 = vmatprep.subr.bf16.mxu0 %v1047_v6  ;;  %1028 = vmatprep.subr.bf16.mxu1 %v1047_v6  ;;  %v1080_v31 = vld [vmem:[%s1456_s0 + $0xb0] ss:$8 sps:$4 sm:$0xff]   ;;  %v1083_v33 = vld [vmem:[%s1456_s0 + $0xc4] ss:$8 sps:$4 sm:$0xff]   ;;  %v1086_v35 = vld [vmem:[%s1456_s0 + $0xc0] ss:$8 sps:$4 sm:$0xff]  }
   0xd   :  { %v1087_v36 = vld [vmem:[%s1456_s0 + $0x54] ss:$8 sps:$4 sm:$0xff]   ;;  %v1091_v38 = vld [vmem:[%s1456_s0 + $0x50] ss:$8 sps:$4 sm:$0xff]   ;;  %v1093_v40 = vld [vmem:[%s1456_s0 + $0x64] ss:$8 sps:$4 sm:$0xff]  }
   0xe   :  { %v1089_v37 = vld [vmem:[%s1456_s0 + $0xd4] ss:$8 sps:$4 sm:$0xff]   ;;  %v1092_v39 = vld [vmem:[%s1456_s0 + $0xd0] ss:$8 sps:$4 sm:$0xff]   ;;  %v1095_v41 = vld [vmem:[%s1456_s0 + $0xe4] ss:$8 sps:$4 sm:$0xff]  }
   0xf   :  { %920 = vmatpush3.bf16.msra.mxu0 %v1048_v7  ;;  %1036 = vmatpush3.bf16.msra.mxu1 %v1048_v7  ;;  %v1097_v42 = vld [vmem:[%s1456_s0 + $0x60] ss:$8 sps:$4 sm:$0xff]   ;;  %v1099_v44 = vld [vmem:[%s1456_s0 + $0x74] ss:$8 sps:$4 sm:$0xff]   ;;  %v1103_v46 = vld [vmem:[%s1456_s0 + $0x70] ss:$8 sps:$4 sm:$0xff]  }
  0x10   :  { %921 = vmatprep.subr.bf16.mxu0 %v1049_v8  ;;  %1029 = vmatprep.subr.bf16.mxu1 %v1049_v8  ;;  %v1098_v43 = vld [vmem:[%s1456_s0 + $0xe0] ss:$8 sps:$4 sm:$0xff]   ;;  %v1101_v45 = vld [vmem:[%s1456_s0 + $0xf4] ss:$8 sps:$4 sm:$0xff]   ;;  %v1104_v47 = vld [vmem:[%s1456_s0 + $0xf0] ss:$8 sps:$4 sm:$0xff]  }
  0x11   :  { %v1277_v50 = vld [vmem:[%s1457_s2] ss:$0 sm:$0xff] }
  0x13   :  { %922 = vmatpush3.bf16.msra.mxu0 %v1050_v9  ;;  %1037 = vmatpush3.bf16.msra.mxu1 %v1050_v9 }
  0x14   :  { %923 = vmatprep.subr.bf16.mxu0 %v1051_v10  ;;  %1030 = vmatprep.subr.bf16.mxu1 %v1051_v10 }
  0x17   :  { %924 = vmatpush3.bf16.msra.mxu0 %v1052_v13  ;;  %1038 = vmatpush3.bf16.msra.mxu1 %v1052_v13 }
  0x18   :  { %925 = vmatprep.subr.bf16.mxu0 %v1053_v14  ;;  %1031 = vmatprep.subr.bf16.mxu1 %v1053_v14 }
  0x1b   :  { %926 = vmatpush3.bf16.msra.mxu0 %v1054_v15  ;;  %1039 = vmatpush3.bf16.msra.mxu1 %v1054_v15 }
  0x1c   :  { %927 = vmatprep.subr.bf16.mxu0 %v1055_v16  ;;  %1032 = vmatprep.subr.bf16.mxu1 %v1055_v16 }
  0x1f   :  { %928 = vmatpush3.bf16.msra.mxu0 %v1056_v17  ;;  %1040 = vmatpush3.bf16.msra.mxu1 %v1056_v17 }
  0x22   :  { %377 = vmatmul.mubr.bf16.vlgmr.msra.gmra.mrb[0].mxu0 %v1057_v18  ;;  %441 = vmatmul.mubr.bf16.vlgmr.msra.gmra.mrb[0].mxu1 %v1060_v19 }
  0x23   :  { %384 = vmatprep.mubr.bf16.mxu0 %v1063_v20  ;;  %448 = vmatprep.mubr.bf16.mxu1 %v1065_v21 }
  0x2a   :  { %385 = vmatmul.mubr.bf16.gmra.mrb[4].mxu0 %v1067_v22  ;;  %449 = vmatmul.mubr.bf16.gmra.mrb[4].mxu1 %v1068_v23 }
  0x2b   :  { %392 = vmatprep.mubr.bf16.mxu0 %v1069_v24  ;;  %456 = vmatprep.mubr.bf16.mxu1 %v1071_v25 }
  0x32   :  { %393 = vmatmul.mubr.bf16.gmra.mrb[8].mxu0 %v1073_v26  ;;  %457 = vmatmul.mubr.bf16.gmra.mrb[8].mxu1 %v1074_v27 }
  0x33   :  { %400 = vmatprep.mubr.bf16.mxu0 %v1075_v28  ;;  %464 = vmatprep.mubr.bf16.mxu1 %v1077_v29 }
  0x3a   :  { %401 = vmatmul.mubr.bf16.gmra.mrb[12].mxu0 %v1079_v30  ;;  %465 = vmatmul.mubr.bf16.gmra.mrb[12].mxu1 %v1080_v31 }
  0x3b   :  { %408 = vmatprep.mubr.bf16.mxu0 %v1081_v32  ;;  %472 = vmatprep.mubr.bf16.mxu1 %v1083_v33 }
  0x42   :  { %409 = vmatmul.mubr.bf16.gmra.mrb[16].mxu0 %v1085_v34  ;;  %473 = vmatmul.mubr.bf16.gmra.mrb[16].mxu1 %v1086_v35 }
  0x43   :  { %416 = vmatprep.mubr.bf16.mxu0 %v1087_v36  ;;  %480 = vmatprep.mubr.bf16.mxu1 %v1089_v37 }
  0x4a   :  { %417 = vmatmul.mubr.bf16.gmra.mrb[20].mxu0 %v1091_v38  ;;  %481 = vmatmul.mubr.bf16.gmra.mrb[20].mxu1 %v1092_v39 }
  0x4b   :  { %424 = vmatprep.mubr.bf16.mxu0 %v1093_v40  ;;  %488 = vmatprep.mubr.bf16.mxu1 %v1095_v41 }
  0x52   :  { %425 = vmatmul.mubr.bf16.gmra.mrb[24].mxu0 %v1097_v42  ;;  %489 = vmatmul.mubr.bf16.gmra.mrb[24].mxu1 %v1098_v43 }
  0x53   :  { %432 = vmatprep.mubr.bf16.mxu0 %v1099_v44  ;;  %496 = vmatprep.mubr.bf16.mxu1 %v1101_v45 }
  0x5a   :  { %433 = vmatmul.mubr.bf16.gmra.mrb[28].mxu0 %v1103_v46  ;;  %497 = vmatmul.mubr.bf16.gmra.mrb[28].mxu1 %v1104_v47 }
  0xf5   :  { %v929_v48 = vpop.f32.mrb[0].mxu0  ;;  %v977_v49 = vpop.f32.mrb[0].mxu1 }
  0xf6   :  { %v930_v51 = vpop.f32.mrb[1].mxu0  ;;  %v978_v52 = vpop.f32.mrb[1].mxu1 }
  0xf7   :  { %v931_v53 = vadd.f32 %v930_v51, %v929_v48  ;;  %v979_v54 = vadd.f32 %v978_v52, %v977_v49  ;;  %v932_v55 = vpop.f32.mrb[2].mxu0  ;;  %v980_v56 = vpop.f32.mrb[2].mxu1 }
  0xf8   :  { %v933_v57 = vpop.f32.mrb[3].mxu0  ;;  %v981_v58 = vpop.f32.mrb[3].mxu1 }
  0xf9   :  { %v379_v59 = vadd.f32 %v931_v53, %v1277_v50  ;;  %v443_v60 = vadd.f32 %v979_v54, %v1277_v50  ;;  %v934_v61 = vadd.f32 %v933_v57, %v932_v55  ;;  %v982_v62 = vadd.f32 %v981_v58, %v980_v56 }
  0xfb   :  { %505 = vst [vmem:[%s1458_s3] sm:$0xff] %v379_v59  ;;  %521 = vst [vmem:[%s1458_s3 + $0x80] sm:$0xff] %v443_v60  ;;  %v382_v63 = vadd.f32 %v934_v61, %v1277_v50  ;;  %v446_v0 = vadd.f32 %v982_v62, %v1277_v50 }
  0xfd   :  { %506 = vst [vmem:[%s1458_s3 + $0x8] sm:$0xff] %v382_v63  ;;  %v821_v1 = vpack.c.bf16 %v382_v63, %v379_v59  ;;  %522 = vst [vmem:[%s1458_s3 + $0x88] sm:$0xff] %v446_v0  ;;  %v861_v2 = vpack.c.bf16 %v446_v0, %v443_v60  ;;  %v935_v3 = vpop.f32.mrb[4].mxu0  ;;  %v983_v4 = vpop.f32.mrb[4].mxu1 }
  0xfe   :  { %v936_v5 = vpop.f32.mrb[5].mxu0  ;;  %v984_v6 = vpop.f32.mrb[5].mxu1 }
  0xff   :  { %822 = vst [vmem:[%s1459_s4] sm:$0xff] %v821_v1   ;;  %905 = vst [vmem:[%s1459_s4 + $0x40] sm:$0xff] %v861_v2   ;;  %v937_v7 = vadd.f32 %v936_v5, %v935_v3  ;;  %v985_v8 = vadd.f32 %v984_v6, %v983_v4  ;;  %v938_v9 = vpop.f32.mrb[6].mxu0  ;;  %v986_v10 = vpop.f32.mrb[6].mxu1 }
 0x100   :  { %v939_v11 = vpop.f32.mrb[7].mxu0  ;;  %v987_v12 = vpop.f32.mrb[7].mxu1 }
 0x101   :  { %v387_v13 = vadd.f32 %v937_v7, %v1277_v50  ;;  %v451_v14 = vadd.f32 %v985_v8, %v1277_v50  ;;  %v940_v15 = vadd.f32 %v939_v11, %v938_v9  ;;  %v988_v16 = vadd.f32 %v987_v12, %v986_v10 }
 0x103   :  { %507 = vst [vmem:[%s1458_s3 + $0x10] sm:$0xff] %v387_v13  ;;  %523 = vst [vmem:[%s1458_s3 + $0x90] sm:$0xff] %v451_v14  ;;  %v390_v17 = vadd.f32 %v940_v15, %v1277_v50  ;;  %v454_v18 = vadd.f32 %v988_v16, %v1277_v50 }
 0x105   :  { %508 = vst [vmem:[%s1458_s3 + $0x18] sm:$0xff] %v390_v17  ;;  %v826_v19 = vpack.c.bf16 %v390_v17, %v387_v13  ;;  %524 = vst [vmem:[%s1458_s3 + $0x98] sm:$0xff] %v454_v18  ;;  %v866_v20 = vpack.c.bf16 %v454_v18, %v451_v14  ;;  %v941_v21 = vpop.f32.mrb[8].mxu0  ;;  %v989_v22 = vpop.f32.mrb[8].mxu1 }
 0x106   :  { %v942_v23 = vpop.f32.mrb[9].mxu0  ;;  %v990_v24 = vpop.f32.mrb[9].mxu1 }
 0x107   :  { %898 = vst [vmem:[%s1459_s4 + $0x8] sm:$0xff] %v826_v19   ;;  %906 = vst [vmem:[%s1459_s4 + $0x48] sm:$0xff] %v866_v20   ;;  %v943_v25 = vadd.f32 %v942_v23, %v941_v21  ;;  %v991_v26 = vadd.f32 %v990_v24, %v989_v22  ;;  %v944_v27 = vpop.f32.mrb[10].mxu0  ;;  %v992_v28 = vpop.f32.mrb[10].mxu1 }
 0x108   :  { %v945_v29 = vpop.f32.mrb[11].mxu0  ;;  %v993_v30 = vpop.f32.mrb[11].mxu1 }
 0x109   :  { %v395_v31 = vadd.f32 %v943_v25, %v1277_v50  ;;  %v459_v32 = vadd.f32 %v991_v26, %v1277_v50  ;;  %v946_v33 = vadd.f32 %v945_v29, %v944_v27  ;;  %v994_v34 = vadd.f32 %v993_v30, %v992_v28 }
 0x10b   :  { %509 = vst [vmem:[%s1458_s3 + $0x20] sm:$0xff] %v395_v31  ;;  %525 = vst [vmem:[%s1458_s3 + $0xa0] sm:$0xff] %v459_v32  ;;  %v398_v35 = vadd.f32 %v946_v33, %v1277_v50  ;;  %v462_v36 = vadd.f32 %v994_v34, %v1277_v50 }
 0x10d   :  { %510 = vst [vmem:[%s1458_s3 + $0x28] sm:$0xff] %v398_v35  ;;  %v831_v37 = vpack.c.bf16 %v398_v35, %v395_v31  ;;  %526 = vst [vmem:[%s1458_s3 + $0xa8] sm:$0xff] %v462_v36  ;;  %v871_v38 = vpack.c.bf16 %v462_v36, %v459_v32  ;;  %v947_v39 = vpop.f32.mrb[12].mxu0  ;;  %v995_v40 = vpop.f32.mrb[12].mxu1 }
 0x10e   :  { %v948_v41 = vpop.f32.mrb[13].mxu0  ;;  %v996_v42 = vpop.f32.mrb[13].mxu1 }
 0x10f   :  { %899 = vst [vmem:[%s1459_s4 + $0x10] sm:$0xff] %v831_v37   ;;  %907 = vst [vmem:[%s1459_s4 + $0x50] sm:$0xff] %v871_v38   ;;  %v949_v43 = vadd.f32 %v948_v41, %v947_v39  ;;  %v997_v44 = vadd.f32 %v996_v42, %v995_v40  ;;  %v950_v45 = vpop.f32.mrb[14].mxu0  ;;  %v998_v46 = vpop.f32.mrb[14].mxu1 }
 0x110   :  { %v951_v47 = vpop.f32.mrb[15].mxu0  ;;  %v999_v48 = vpop.f32.mrb[15].mxu1 }
 0x111   :  { %v403_v49 = vadd.f32 %v949_v43, %v1277_v50  ;;  %v467_v51 = vadd.f32 %v997_v44, %v1277_v50  ;;  %v952_v52 = vadd.f32 %v951_v47, %v950_v45  ;;  %v1000_v53 = vadd.f32 %v999_v48, %v998_v46 }
 0x113   :  { %511 = vst [vmem:[%s1458_s3 + $0x30] sm:$0xff] %v403_v49  ;;  %527 = vst [vmem:[%s1458_s3 + $0xb0] sm:$0xff] %v467_v51  ;;  %v406_v54 = vadd.f32 %v952_v52, %v1277_v50  ;;  %v470_v55 = vadd.f32 %v1000_v53, %v1277_v50 }
 0x115   :  { %512 = vst [vmem:[%s1458_s3 + $0x38] sm:$0xff] %v406_v54  ;;  %v836_v56 = vpack.c.bf16 %v406_v54, %v403_v49  ;;  %528 = vst [vmem:[%s1458_s3 + $0xb8] sm:$0xff] %v470_v55  ;;  %v876_v57 = vpack.c.bf16 %v470_v55, %v467_v51  ;;  %v953_v58 = vpop.f32.mrb[16].mxu0  ;;  %v1001_v59 = vpop.f32.mrb[16].mxu1 }
 0x116   :  { %v954_v60 = vpop.f32.mrb[17].mxu0  ;;  %v1002_v61 = vpop.f32.mrb[17].mxu1 }
 0x117   :  { %900 = vst [vmem:[%s1459_s4 + $0x18] sm:$0xff] %v836_v56   ;;  %908 = vst [vmem:[%s1459_s4 + $0x58] sm:$0xff] %v876_v57   ;;  %v955_v62 = vadd.f32 %v954_v60, %v953_v58  ;;  %v1003_v63 = vadd.f32 %v1002_v61, %v1001_v59  ;;  %v956_v0 = vpop.f32.mrb[18].mxu0  ;;  %v1004_v1 = vpop.f32.mrb[18].mxu1 }
 0x118   :  { %v957_v2 = vpop.f32.mrb[19].mxu0  ;;  %v1005_v3 = vpop.f32.mrb[19].mxu1 }
 0x119   :  { %v411_v4 = vadd.f32 %v955_v62, %v1277_v50  ;;  %v475_v5 = vadd.f32 %v1003_v63, %v1277_v50  ;;  %v958_v6 = vadd.f32 %v957_v2, %v956_v0  ;;  %v1006_v7 = vadd.f32 %v1005_v3, %v1004_v1 }
 0x11b   :  { %513 = vst [vmem:[%s1458_s3 + $0x40] sm:$0xff] %v411_v4  ;;  %529 = vst [vmem:[%s1458_s3 + $0xc0] sm:$0xff] %v475_v5  ;;  %v414_v8 = vadd.f32 %v958_v6, %v1277_v50  ;;  %v478_v9 = vadd.f32 %v1006_v7, %v1277_v50 }
 0x11d   :  { %514 = vst [vmem:[%s1458_s3 + $0x48] sm:$0xff] %v414_v8  ;;  %v841_v10 = vpack.c.bf16 %v414_v8, %v411_v4  ;;  %530 = vst [vmem:[%s1458_s3 + $0xc8] sm:$0xff] %v478_v9  ;;  %v881_v11 = vpack.c.bf16 %v478_v9, %v475_v5  ;;  %v959_v12 = vpop.f32.mrb[20].mxu0  ;;  %v1007_v13 = vpop.f32.mrb[20].mxu1 }
 0x11e   :  { %v960_v14 = vpop.f32.mrb[21].mxu0  ;;  %v1008_v15 = vpop.f32.mrb[21].mxu1 }
 0x11f   :  { %901 = vst [vmem:[%s1459_s4 + $0x20] sm:$0xff] %v841_v10   ;;  %909 = vst [vmem:[%s1459_s4 + $0x60] sm:$0xff] %v881_v11   ;;  %v961_v16 = vadd.f32 %v960_v14, %v959_v12  ;;  %v1009_v17 = vadd.f32 %v1008_v15, %v1007_v13  ;;  %v962_v18 = vpop.f32.mrb[22].mxu0  ;;  %v1010_v19 = vpop.f32.mrb[22].mxu1 }
 0x120   :  { %v963_v20 = vpop.f32.mrb[23].mxu0  ;;  %v1011_v21 = vpop.f32.mrb[23].mxu1 }
 0x121   :  { %v419_v22 = vadd.f32 %v961_v16, %v1277_v50  ;;  %v483_v23 = vadd.f32 %v1009_v17, %v1277_v50  ;;  %v964_v24 = vadd.f32 %v963_v20, %v962_v18  ;;  %v1012_v25 = vadd.f32 %v1011_v21, %v1010_v19 }
 0x123   :  { %515 = vst [vmem:[%s1458_s3 + $0x50] sm:$0xff] %v419_v22  ;;  %531 = vst [vmem:[%s1458_s3 + $0xd0] sm:$0xff] %v483_v23  ;;  %v422_v26 = vadd.f32 %v964_v24, %v1277_v50  ;;  %v486_v27 = vadd.f32 %v1012_v25, %v1277_v50 }
 0x125   :  { %516 = vst [vmem:[%s1458_s3 + $0x58] sm:$0xff] %v422_v26  ;;  %v846_v28 = vpack.c.bf16 %v422_v26, %v419_v22  ;;  %532 = vst [vmem:[%s1458_s3 + $0xd8] sm:$0xff] %v486_v27  ;;  %v886_v29 = vpack.c.bf16 %v486_v27, %v483_v23  ;;  %v965_v30 = vpop.f32.mrb[24].mxu0  ;;  %v1013_v31 = vpop.f32.mrb[24].mxu1 }
 0x126   :  { %v966_v32 = vpop.f32.mrb[25].mxu0  ;;  %v1014_v33 = vpop.f32.mrb[25].mxu1 }
 0x127   :  { %902 = vst [vmem:[%s1459_s4 + $0x28] sm:$0xff] %v846_v28   ;;  %910 = vst [vmem:[%s1459_s4 + $0x68] sm:$0xff] %v886_v29   ;;  %v967_v34 = vadd.f32 %v966_v32, %v965_v30  ;;  %v1015_v35 = vadd.f32 %v1014_v33, %v1013_v31  ;;  %v968_v36 = vpop.f32.mrb[26].mxu0  ;;  %v1016_v37 = vpop.f32.mrb[26].mxu1 }
 0x128   :  { %v969_v38 = vpop.f32.mrb[27].mxu0  ;;  %v1017_v39 = vpop.f32.mrb[27].mxu1 }
 0x129   :  { %v427_v40 = vadd.f32 %v967_v34, %v1277_v50  ;;  %v491_v41 = vadd.f32 %v1015_v35, %v1277_v50  ;;  %v970_v42 = vadd.f32 %v969_v38, %v968_v36  ;;  %v1018_v43 = vadd.f32 %v1017_v39, %v1016_v37 }
 0x12b   :  { %517 = vst [vmem:[%s1458_s3 + $0x60] sm:$0xff] %v427_v40  ;;  %533 = vst [vmem:[%s1458_s3 + $0xe0] sm:$0xff] %v491_v41  ;;  %v430_v44 = vadd.f32 %v970_v42, %v1277_v50  ;;  %v494_v45 = vadd.f32 %v1018_v43, %v1277_v50 }
 0x12d   :  { %518 = vst [vmem:[%s1458_s3 + $0x68] sm:$0xff] %v430_v44  ;;  %v851_v46 = vpack.c.bf16 %v430_v44, %v427_v40  ;;  %534 = vst [vmem:[%s1458_s3 + $0xe8] sm:$0xff] %v494_v45  ;;  %v891_v47 = vpack.c.bf16 %v494_v45, %v491_v41  ;;  %v971_v48 = vpop.f32.mrb[28].mxu0  ;;  %v1019_v49 = vpop.f32.mrb[28].mxu1 }
 0x12e   :  { %v972_v51 = vpop.f32.mrb[29].mxu0  ;;  %v1020_v52 = vpop.f32.mrb[29].mxu1 }
 0x12f   :  { %903 = vst [vmem:[%s1459_s4 + $0x30] sm:$0xff] %v851_v46   ;;  %911 = vst [vmem:[%s1459_s4 + $0x70] sm:$0xff] %v891_v47   ;;  %v973_v53 = vadd.f32 %v972_v51, %v971_v48  ;;  %v1021_v54 = vadd.f32 %v1020_v52, %v1019_v49  ;;  %v974_v55 = vpop.f32.mrb[30].mxu0  ;;  %v1022_v56 = vpop.f32.mrb[30].mxu1 }
 0x130   :  { %v975_v57 = vpop.f32.mrb[31].mxu0  ;;  %v1023_v58 = vpop.f32.mrb[31].mxu1 }
 0x131   :  { %v435_v59 = vadd.f32 %v973_v53, %v1277_v50  ;;  %v499_v60 = vadd.f32 %v1021_v54, %v1277_v50  ;;  %v976_v61 = vadd.f32 %v975_v57, %v974_v55  ;;  %v1024_v62 = vadd.f32 %v1023_v58, %v1022_v56 }
 0x133   :  { %519 = vst [vmem:[%s1458_s3 + $0x70] sm:$0xff] %v435_v59  ;;  %535 = vst [vmem:[%s1458_s3 + $0xf0] sm:$0xff] %v499_v60  ;;  %v438_v63 = vadd.f32 %v976_v61, %v1277_v50  ;;  %v502_v0 = vadd.f32 %v1024_v62, %v1277_v50 }
 0x135   :  { %520 = vst [vmem:[%s1458_s3 + $0x78] sm:$0xff] %v438_v63  ;;  %v856_v1 = vpack.c.bf16 %v438_v63, %v435_v59  ;;  %536 = vst [vmem:[%s1458_s3 + $0xf8] sm:$0xff] %v502_v0  ;;  %v896_v2 = vpack.c.bf16 %v502_v0, %v499_v60 }
 0x137   :  { %904 = vst [vmem:[%s1459_s4 + $0x38] sm:$0xff] %v856_v1   ;;  %912 = vst [vmem:[%s1459_s4 + $0x78] sm:$0xff] %v896_v2  }

// kernel: gae_forward.5
= control target key start
LH: loop header
LB: loop body
LE: loop exit
PB: predicated region body
PF: predicated region fallthrough
CT: control target
= control target key end

     0   :  { %s960_s1 = inlined_call_operand.vmem [shape: bf16[256,128], index: 1, kind: input, shape index: {}, may-alias: {0,1}]   ;;  %s961_s0 = inlined_call_operand.vmem [shape: bf16[256,128], index: 0, kind: input, shape index: {}, may-alias: {0,1}]   ;;  %s962_s2 = inlined_call_operand.vmem [shape: f32[256,256], index: 2, kind: output, shape index: {}]  }
   0x1   :  { %v625_v0 = vld [vmem:[%s960_s1 + $0x40] sm:$0xff]   ;;  %v627_v2 = vld [vmem:[%s960_s1 + $0x48] sm:$0xff]   ;;  %v629_v4 = vld [vmem:[%s960_s1 + $0x50] sm:$0xff]  }
   0x2   :  { %v626_v1 = vld [vmem:[%s960_s1] sm:$0xff]   ;;  %561 = vmatprep.subr.bf16.mxu0 %v625_v0  ;;  %609 = vmatprep.subr.bf16.mxu1 %v625_v0  ;;  %v628_v3 = vld [vmem:[%s960_s1 + $0x8] sm:$0xff]   ;;  %v630_v5 = vld [vmem:[%s960_s1 + $0x10] sm:$0xff]  }
   0x3   :  { %562 = vmatpush3.bf16.xpose.msra.mxu0 %v626_v1  ;;  %617 = vmatpush3.bf16.xpose.msra.mxu1 %v626_v1  ;;  %v631_v6 = vld [vmem:[%s960_s1 + $0x58] sm:$0xff]   ;;  %v641_v7 = vld [vmem:[%s961_s0] sm:$0xff]   ;;  %v635_v12 = vld [vmem:[%s960_s1 + $0x68] sm:$0xff]  }
   0x4   :  { %563 = vmatprep.subr.bf16.mxu0 %v627_v2  ;;  %610 = vmatprep.subr.bf16.mxu1 %v627_v2  ;;  %v642_v8 = vld [vmem:[%s961_s0 + $0x40] sm:$0xff]   ;;  %v632_v9 = vld [vmem:[%s960_s1 + $0x18] sm:$0xff]   ;;  %v636_v13 = vld [vmem:[%s960_s1 + $0x28] sm:$0xff]  }
   0x5   :  { %577 = vmatprep.mubr.bf16.mxu0 %v641_v7  ;;  %593 = vmatprep.mubr.bf16.mxu1 %v642_v8  ;;  %v633_v10 = vld [vmem:[%s960_s1 + $0x60] sm:$0xff]   ;;  %v637_v14 = vld [vmem:[%s960_s1 + $0x70] sm:$0xff]   ;;  %v639_v16 = vld [vmem:[%s960_s1 + $0x78] sm:$0xff]  }
   0x6   :  { %v634_v11 = vld [vmem:[%s960_s1 + $0x20] sm:$0xff]   ;;  %v638_v15 = vld [vmem:[%s960_s1 + $0x30] sm:$0xff]   ;;  %v640_v17 = vld [vmem:[%s960_s1 + $0x38] sm:$0xff]  }
   0x7   :  { %v643_v18 = vld [vmem:[%s961_s0 + $0x8] sm:$0xff]   ;;  %v645_v20 = vld [vmem:[%s961_s0 + $0x10] sm:$0xff]   ;;  %v647_v22 = vld [vmem:[%s961_s0 + $0x18] sm:$0xff]  }
   0x8   :  { %v644_v19 = vld [vmem:[%s961_s0 + $0x48] sm:$0xff]   ;;  %v646_v21 = vld [vmem:[%s961_s0 + $0x50] sm:$0xff]   ;;  %v648_v23 = vld [vmem:[%s961_s0 + $0x58] sm:$0xff]  }
   0x9   :  { %v649_v24 = vld [vmem:[%s961_s0 + $0x20] sm:$0xff]   ;;  %v651_v26 = vld [vmem:[%s961_s0 + $0x28] sm:$0xff]   ;;  %v653_v28 = vld [vmem:[%s961_s0 + $0x30] sm:$0xff]  }
   0xa   :  { %v650_v25 = vld [vmem:[%s961_s0 + $0x60] sm:$0xff]   ;;  %v652_v27 = vld [vmem:[%s961_s0 + $0x68] sm:$0xff]   ;;  %v654_v29 = vld [vmem:[%s961_s0 + $0x70] sm:$0xff]  }
   0xb   :  { %564 = vmatpush3.bf16.xpose.msra.mxu0 %v628_v3  ;;  %618 = vmatpush3.bf16.xpose.msra.mxu1 %v628_v3  ;;  %v655_v30 = vld [vmem:[%s961_s0 + $0x38] sm:$0xff]  }
   0xc   :  { %565 = vmatprep.subr.bf16.mxu0 %v629_v4  ;;  %611 = vmatprep.subr.bf16.mxu1 %v629_v4  ;;  %v656_v31 = vld [vmem:[%s961_s0 + $0x78] sm:$0xff]  }
  0x13   :  { %566 = vmatpush3.bf16.xpose.msra.mxu0 %v630_v5  ;;  %619 = vmatpush3.bf16.xpose.msra.mxu1 %v630_v5 }
  0x14   :  { %567 = vmatprep.subr.bf16.mxu0 %v631_v6  ;;  %612 = vmatprep.subr.bf16.mxu1 %v631_v6 }
  0x1b   :  { %568 = vmatpush3.bf16.xpose.msra.mxu0 %v632_v9  ;;  %620 = vmatpush3.bf16.xpose.msra.mxu1 %v632_v9 }
  0x1c   :  { %569 = vmatprep.subr.bf16.mxu0 %v633_v10  ;;  %613 = vmatprep.subr.bf16.mxu1 %v633_v10 }
  0x23   :  { %570 = vmatpush3.bf16.xpose.msra.mxu0 %v634_v11  ;;  %621 = vmatpush3.bf16.xpose.msra.mxu1 %v634_v11 }
  0x24   :  { %571 = vmatprep.subr.bf16.mxu0 %v635_v12  ;;  %614 = vmatprep.subr.bf16.mxu1 %v635_v12 }
  0x2b   :  { %572 = vmatpush3.bf16.xpose.msra.mxu0 %v636_v13  ;;  %622 = vmatpush3.bf16.xpose.msra.mxu1 %v636_v13 }
  0x2c   :  { %573 = vmatprep.subr.bf16.mxu0 %v637_v14  ;;  %615 = vmatprep.subr.bf16.mxu1 %v637_v14 }
  0x33   :  { %574 = vmatpush3.bf16.xpose.msra.mxu0 %v638_v15  ;;  %623 = vmatpush3.bf16.xpose.msra.mxu1 %v638_v15 }
  0x34   :  { %575 = vmatprep.subr.bf16.mxu0 %v639_v16  ;;  %616 = vmatprep.subr.bf16.mxu1 %v639_v16 }
  0x3b   :  { %576 = vmatpush3.bf16.xpose.msra.mxu0 %v640_v17  ;;  %624 = vmatpush3.bf16.xpose.msra.mxu1 %v640_v17 }
  0x42   :  { %578 = vmatmul.mubr.bf16.vlgmr.msra.gmra.mrb[0].mxu0 %v641_v7  ;;  %594 = vmatmul.mubr.bf16.vlgmr.msra.gmra.mrb[0].mxu1 %v642_v8 }
  0x43   :  { %579 = vmatprep.mubr.bf16.mxu0 %v643_v18  ;;  %595 = vmatprep.mubr.bf16.mxu1 %v644_v19 }
  0x4a   :  { %580 = vmatmul.mubr.bf16.gmra.mrb[4].mxu0 %v643_v18  ;;  %596 = vmatmul.mubr.bf16.gmra.mrb[4].mxu1 %v644_v19 }
  0x4b   :  { %581 = vmatprep.mubr.bf16.mxu0 %v645_v20  ;;  %597 = vmatprep.mubr.bf16.mxu1 %v646_v21 }
  0x52   :  { %582 = vmatmul.mubr.bf16.gmra.mrb[8].mxu0 %v645_v20  ;;  %598 = vmatmul.mubr.bf16.gmra.mrb[8].mxu1 %v646_v21 }
  0x53   :  { %583 = vmatprep.mubr.bf16.mxu0 %v647_v22  ;;  %599 = vmatprep.mubr.bf16.mxu1 %v648_v23 }
  0x5a   :  { %584 = vmatmul.mubr.bf16.gmra.mrb[12].mxu0 %v647_v22  ;;  %600 = vmatmul.mubr.bf16.gmra.mrb[12].mxu1 %v648_v23 }
  0x5b   :  { %585 = vmatprep.mubr.bf16.mxu0 %v649_v24  ;;  %601 = vmatprep.mubr.bf16.mxu1 %v650_v25 }
  0x62   :  { %586 = vmatmul.mubr.bf16.gmra.mrb[16].mxu0 %v649_v24  ;;  %602 = vmatmul.mubr.bf16.gmra.mrb[16].mxu1 %v650_v25 }
  0x63   :  { %587 = vmatprep.mubr.bf16.mxu0 %v651_v26  ;;  %603 = vmatprep.mubr.bf16.mxu1 %v652_v27 }
  0x6a   :  { %588 = vmatmul.mubr.bf16.gmra.mrb[20].mxu0 %v651_v26  ;;  %604 = vmatmul.mubr.bf16.gmra.mrb[20].mxu1 %v652_v27 }
  0x6b   :  { %589 = vmatprep.mubr.bf16.mxu0 %v653_v28  ;;  %605 = vmatprep.mubr.bf16.mxu1 %v654_v29 }
  0x72   :  { %590 = vmatmul.mubr.bf16.gmra.mrb[24].mxu0 %v653_v28  ;;  %606 = vmatmul.mubr.bf16.gmra.mrb[24].mxu1 %v654_v29 }
  0x73   :  { %591 = vmatprep.mubr.bf16.mxu0 %v655_v30  ;;  %607 = vmatprep.mubr.bf16.mxu1 %v656_v31 }
  0x7a   :  { %592 = vmatmul.mubr.bf16.gmra.mrb[28].mxu0 %v655_v30  ;;  %608 = vmatmul.mubr.bf16.gmra.mrb[28].mxu1 %v656_v31 }
 0x115   :  { %v302_v32 = vpop.f32.mrb[0].mxu0  ;;  %v382_v33 = vpop.f32.mrb[0].mxu1 }
 0x116   :  { %461 = vst [vmem:[%s962_s2] sm:$0xff] %v302_v32  ;;  %493 = vst [vmem:[%s962_s2 + $0x100] sm:$0xff] %v382_v33  ;;  %v304_v34 = vpop.f32.mrb[1].mxu0  ;;  %v384_v35 = vpop.f32.mrb[1].mxu1 }
 0x117   :  { %462 = vst [vmem:[%s962_s2 + $0x8] sm:$0xff] %v304_v34  ;;  %494 = vst [vmem:[%s962_s2 + $0x108] sm:$0xff] %v384_v35  ;;  %v306_v36 = vpop.f32.mrb[2].mxu0  ;;  %v386_v37 = vpop.f32.mrb[2].mxu1 }
 0x118   :  { %463 = vst [vmem:[%s962_s2 + $0x10] sm:$0xff] %v306_v36  ;;  %495 = vst [vmem:[%s962_s2 + $0x110] sm:$0xff] %v386_v37  ;;  %v308_v38 = vpop.f32.mrb[3].mxu0  ;;  %v388_v39 = vpop.f32.mrb[3].mxu1 }
 0x119   :  { %464 = vst [vmem:[%s962_s2 + $0x18] sm:$0xff] %v308_v38  ;;  %496 = vst [vmem:[%s962_s2 + $0x118] sm:$0xff] %v388_v39 }
 0x11d   :  { %v312_v40 = vpop.f32.mrb[4].mxu0  ;;  %v392_v41 = vpop.f32.mrb[4].mxu1 }
 0x11e   :  { %465 = vst [vmem:[%s962_s2 + $0x20] sm:$0xff] %v312_v40  ;;  %497 = vst [vmem:[%s962_s2 + $0x120] sm:$0xff] %v392_v41  ;;  %v314_v42 = vpop.f32.mrb[5].mxu0  ;;  %v394_v43 = vpop.f32.mrb[5].mxu1 }
 0x11f   :  { %466 = vst [vmem:[%s962_s2 + $0x28] sm:$0xff] %v314_v42  ;;  %498 = vst [vmem:[%s962_s2 + $0x128] sm:$0xff] %v394_v43  ;;  %v316_v44 = vpop.f32.mrb[6].mxu0  ;;  %v396_v45 = vpop.f32.mrb[6].mxu1 }
 0x120   :  { %467 = vst [vmem:[%s962_s2 + $0x30] sm:$0xff] %v316_v44  ;;  %499 = vst [vmem:[%s962_s2 + $0x130] sm:$0xff] %v396_v45  ;;  %v318_v46 = vpop.f32.mrb[7].mxu0  ;;  %v398_v47 = vpop.f32.mrb[7].mxu1 }
 0x121   :  { %468 = vst [vmem:[%s962_s2 + $0x38] sm:$0xff] %v318_v46  ;;  %500 = vst [vmem:[%s962_s2 + $0x138] sm:$0xff] %v398_v47 }
 0x125   :  { %v322_v48 = vpop.f32.mrb[8].mxu0  ;;  %v402_v49 = vpop.f32.mrb[8].mxu1 }
 0x126   :  { %469 = vst [vmem:[%s962_s2 + $0x40] sm:$0xff] %v322_v48  ;;  %501 = vst [vmem:[%s962_s2 + $0x140] sm:$0xff] %v402_v49  ;;  %v324_v50 = vpop.f32.mrb[9].mxu0  ;;  %v404_v51 = vpop.f32.mrb[9].mxu1 }
 0x127   :  { %470 = vst [vmem:[%s962_s2 + $0x48] sm:$0xff] %v324_v50  ;;  %502 = vst [vmem:[%s962_s2 + $0x148] sm:$0xff] %v404_v51  ;;  %v326_v52 = vpop.f32.mrb[10].mxu0  ;;  %v406_v53 = vpop.f32.mrb[10].mxu1 }
 0x128   :  { %471 = vst [vmem:[%s962_s2 + $0x50] sm:$0xff] %v326_v52  ;;  %503 = vst [vmem:[%s962_s2 + $0x150] sm:$0xff] %v406_v53  ;;  %v328_v54 = vpop.f32.mrb[11].mxu0  ;;  %v408_v55 = vpop.f32.mrb[11].mxu1 }
 0x129   :  { %472 = vst [vmem:[%s962_s2 + $0x58] sm:$0xff] %v328_v54  ;;  %504 = vst [vmem:[%s962_s2 + $0x158] sm:$0xff] %v408_v55 }
 0x12d   :  { %v332_v56 = vpop.f32.mrb[12].mxu0  ;;  %v412_v57 = vpop.f32.mrb[12].mxu1 }
 0x12e   :  { %473 = vst [vmem:[%s962_s2 + $0x60] sm:$0xff] %v332_v56  ;;  %505 = vst [vmem:[%s962_s2 + $0x160] sm:$0xff] %v412_v57  ;;  %v334_v58 = vpop.f32.mrb[13].mxu0  ;;  %v414_v59 = vpop.f32.mrb[13].mxu1 }
 0x12f   :  { %474 = vst [vmem:[%s962_s2 + $0x68] sm:$0xff] %v334_v58  ;;  %506 = vst [vmem:[%s962_s2 + $0x168] sm:$0xff] %v414_v59  ;;  %v336_v60 = vpop.f32.mrb[14].mxu0  ;;  %v416_v61 = vpop.f32.mrb[14].mxu1 }
 0x130   :  { %475 = vst [vmem:[%s962_s2 + $0x70] sm:$0xff] %v336_v60  ;;  %507 = vst [vmem:[%s962_s2 + $0x170] sm:$0xff] %v416_v61  ;;  %v338_v62 = vpop.f32.mrb[15].mxu0  ;;  %v418_v63 = vpop.f32.mrb[15].mxu1 }
 0x131   :  { %476 = vst [vmem:[%s962_s2 + $0x78] sm:$0xff] %v338_v62  ;;  %508 = vst [vmem:[%s962_s2 + $0x178] sm:$0xff] %v418_v63 }
 0x135   :  { %v342_v0 = vpop.f32.mrb[16].mxu0  ;;  %v422_v1 = vpop.f32.mrb[16].mxu1 }
 0x136   :  { %477 = vst [vmem:[%s962_s2 + $0x80] sm:$0xff] %v342_v0  ;;  %509 = vst [vmem:[%s962_s2 + $0x180] sm:$0xff] %v422_v1  ;;  %v344_v2 = vpop.f32.mrb[17].mxu0  ;;  %v424_v3 = vpop.f32.mrb[17].mxu1 }
 0x137   :  { %478 = vst [vmem:[%s962_s2 + $0x88] sm:$0xff] %v344_v2  ;;  %510 = vst [vmem:[%s962_s2 + $0x188] sm:$0xff] %v424_v3  ;;  %v346_v4 = vpop.f32.mrb[18].mxu0  ;;  %v426_v5 = vpop.f32.mrb[18].mxu1 }
 0x138   :  { %479 = vst [vmem:[%s962_s2 + $0x90] sm:$0xff] %v346_v4  ;;  %511 = vst [vmem:[%s962_s2 + $0x190] sm:$0xff] %v426_v5  ;;  %v348_v6 = vpop.f32.mrb[19].mxu0  ;;  %v428_v7 = vpop.f32.mrb[19].mxu1 }
 0x139   :  { %480 = vst [vmem:[%s962_s2 + $0x98] sm:$0xff] %v348_v6  ;;  %512 = vst [vmem:[%s962_s2 + $0x198] sm:$0xff] %v428_v7 }
 0x13d   :  { %v352_v8 = vpop.f32.mrb[20].mxu0  ;;  %v432_v9 = vpop.f32.mrb[20].mxu1 }
 0x13e   :  { %481 = vst [vmem:[%s962_s2 + $0xa0] sm:$0xff] %v352_v8  ;;  %513 = vst [vmem:[%s962_s2 + $0x1a0] sm:$0xff] %v432_v9  ;;  %v354_v10 = vpop.f32.mrb[21].mxu0  ;;  %v434_v11 = vpop.f32.mrb[21].mxu1 }
 0x13f   :  { %482 = vst [vmem:[%s962_s2 + $0xa8] sm:$0xff] %v354_v10  ;;  %514 = vst [vmem:[%s962_s2 + $0x1a8] sm:$0xff] %v434_v11  ;;  %v356_v12 = vpop.f32.mrb[22].mxu0  ;;  %v436_v13 = vpop.f32.mrb[22].mxu1 }
 0x140   :  { %483 = vst [vmem:[%s962_s2 + $0xb0] sm:$0xff] %v356_v12  ;;  %515 = vst [vmem:[%s962_s2 + $0x1b0] sm:$0xff] %v436_v13  ;;  %v358_v14 = vpop.f32.mrb[23].mxu0  ;;  %v438_v15 = vpop.f32.mrb[23].mxu1 }
 0x141   :  { %484 = vst [vmem:[%s962_s2 + $0xb8] sm:$0xff] %v358_v14  ;;  %516 = vst [vmem:[%s962_s2 + $0x1b8] sm:$0xff] %v438_v15 }
 0x145   :  { %v362_v16 = vpop.f32.mrb[24].mxu0  ;;  %v442_v17 = vpop.f32.mrb[24].mxu1 }
 0x146   :  { %485 = vst [vmem:[%s962_s2 + $0xc0] sm:$0xff] %v362_v16  ;;  %517 = vst [vmem:[%s962_s2 + $0x1c0] sm:$0xff] %v442_v17  ;;  %v364_v18 = vpop.f32.mrb[25].mxu0  ;;  %v444_v19 = vpop.f32.mrb[25].mxu1 }
 0x147   :  { %486 = vst [vmem:[%s962_s2 + $0xc8] sm:$0xff] %v364_v18  ;;  %518 = vst [vmem:[%s962_s2 + $0x1c8] sm:$0xff] %v444_v19  ;;  %v366_v20 = vpop.f32.mrb[26].mxu0  ;;  %v446_v21 = vpop.f32.mrb[26].mxu1 }
 0x148   :  { %487 = vst [vmem:[%s962_s2 + $0xd0] sm:$0xff] %v366_v20  ;;  %519 = vst [vmem:[%s962_s2 + $0x1d0] sm:$0xff] %v446_v21  ;;  %v368_v22 = vpop.f32.mrb[27].mxu0  ;;  %v448_v23 = vpop.f32.mrb[27].mxu1 }
 0x149   :  { %488 = vst [vmem:[%s962_s2 + $0xd8] sm:$0xff] %v368_v22  ;;  %520 = vst [vmem:[%s962_s2 + $0x1d8] sm:$0xff] %v448_v23 }
 0x14d   :  { %v372_v24 = vpop.f32.mrb[28].mxu0  ;;  %v452_v25 = vpop.f32.mrb[28].mxu1 }
 0x14e   :  { %489 = vst [vmem:[%s962_s2 + $0xe0] sm:$0xff] %v372_v24  ;;  %521 = vst [vmem:[%s962_s2 + $0x1e0] sm:$0xff] %v452_v25  ;;  %v374_v26 = vpop.f32.mrb[29].mxu0  ;;  %v454_v27 = vpop.f32.mrb[29].mxu1 }
 0x14f   :  { %490 = vst [vmem:[%s962_s2 + $0xe8] sm:$0xff] %v374_v26  ;;  %522 = vst [vmem:[%s962_s2 + $0x1e8] sm:$0xff] %v454_v27  ;;  %v376_v28 = vpop.f32.mrb[30].mxu0  ;;  %v456_v29 = vpop.f32.mrb[30].mxu1 }
 0x150   :  { %491 = vst [vmem:[%s962_s2 + $0xf0] sm:$0xff] %v376_v28  ;;  %523 = vst [vmem:[%s962_s2 + $0x1f0] sm:$0xff] %v456_v29  ;;  %v378_v30 = vpop.f32.mrb[31].mxu0  ;;  %v458_v31 = vpop.f32.mrb[31].mxu1 }
 0x151   :  { %492 = vst [vmem:[%s962_s2 + $0xf8] sm:$0xff] %v378_v30  ;;  %524 = vst [vmem:[%s962_s2 + $0x1f8] sm:$0xff] %v458_v31 }

</bundles_post_ra>
